<compile_context>
chip_gen: v7x
topology: tpu7x:2x2x1
jax: 0.10.0
libtpu: 0.0.40
codegen_flags: <defaults>
</compile_context>

<pallas_src>
import functools

import jax
import jax.numpy as jnp
from jax import lax
from jax.experimental import pallas as pl
from jax.experimental.pallas import tpu as pltpu


def _round_up(x, m):
    return (x + m - 1) // m * m


def _tpu_target():
    """(generation, physical per-core VMEM bytes), from the live device."""
    kind = ""
    try:
        kind = jax.devices()[0].device_kind.lower()
    except Exception:
        pass
    if any(v in kind for v in ("v2", "v3", "v4", "v5")):
        gen, vmem = 5, 128 << 20
    elif "7" in kind:
        gen, vmem = 7, 64 << 20
    else:
        gen, vmem = 6, 128 << 20
    try:  # refine with the real VMEM capacity when available
        cap = pltpu.get_tpu_info().vmem_capacity_bytes
        if cap:
            vmem = cap
    except Exception:
        pass
    return gen, vmem


def _moe_config(F, H, wbytes, xbytes, obytes, TK=None):
    """Chip-aware tile sizes + explicit VMEM budget.

    tf depends only on (F, H, weight dtype, chip) so that prepare_moe_weights
    and block_sparse_moe always agree on the fused w1/w3 layout; tm is fitted
    afterwards against the remaining budget (it only grows arithmetic intensity
    and per-expert padding, never the weight layout).
    """
    gen, vmem_phys = _tpu_target()
    if gen >= 7:    # 64 MiB VMEM, 2 TCs stream their own weight copies
        tm_t, tf_t, vmem_limit = 384, 256, 52 << 20
    elif gen == 6:  # 128 MiB VMEM, needs ~675 flop/byte on streamed weights
        tm_t, tf_t, vmem_limit = 512, 512, 104 << 20
    else:           # v5e: 128 MiB physical, 16 MiB scoped default must be raised
        tm_t, tf_t, vmem_limit = 256, 512, 96 << 20
    vmem_limit = min(vmem_limit, vmem_phys - (4 << 20))
    budget = vmem_limit - (6 << 20)  # headroom for mosaic internal scratch

    # ---- FFN tile (weights only) ----
    if F % 128 != 0:
        tf = F  # toy sizes: full dim
    else:
        tf = 128
        for cand in (512, 256, 128):
            if cand <= tf_t and F % cand == 0:
                tf = cand
                break
        weight_budget = int(budget * 0.6)
        # double-buffered fused (H, 2*tf) + (tf, H) weight tiles = 6*H*tf*wbytes
        while 6 * H * tf * wbytes > weight_budget and tf > 128 and F % (tf // 2) == 0:
            tf //= 2

    if TK is None:
        return tf, None, vmem_limit

    # ---- token tile ----
    if TK >= 128:
        tm = min(tm_t, _round_up(TK, 128))
    else:
        tm = max(8, _round_up(TK, 8))

    def act_bytes(tm_):
        # 2x x tile + 2x out tile + 2x scale tile + f32 accumulator
        return tm_ * (2 * H * xbytes + 2 * H * obytes + 2 * 128 * xbytes + 4 * H)

    remaining = budget - 6 * H * tf * wbytes
    while tm > 128 and act_bytes(tm) > remaining:
        tm = max(128, _round_up(tm // 2, 8))
    tm = max(8, _round_up(tm, 8))

    footprint = 6 * H * tf * wbytes + act_bytes(tm)
    vmem_limit = max(vmem_limit, min(footprint + (8 << 20), vmem_phys))
    return tf, tm, int(vmem_limit)


def prepare_moe_weights(w1, w2, w3, *, num_experts, ffn_dim):
    """One-time weight relayout.  Do this at weight-load time, NOT per forward
    call: it reads/writes the full w1/w3 tensors in HBM.

    Returns (w13, w2):
      w13: (E*H, 2*F) -- per expert, per ffn tile: [w1^T tile | w3^T tile], so
           the kernel does a single (tm,H)x(H,2*tf) matmul per grid step and
           slices h1/h3 at a lane-aligned boundary.
      w2 : (E*F, H)   -- unchanged (already in the right orientation).
    """
    E, F = num_experts, ffn_dim
    H = w1.shape[-1]
    wbytes = jnp.dtype(w1.dtype).itemsize
    tf, _, _ = _moe_config(F, H, wbytes, wbytes, wbytes, TK=None)
    n_ftiles = F // tf
    w1_r = jnp.transpose(w1.reshape(E, F, H), (0, 2, 1)).reshape(E, H, n_ftiles, tf)
    w3_r = jnp.transpose(w3.reshape(E, F, H), (0, 2, 1)).reshape(E, H, n_ftiles, tf)
    w13 = jnp.stack([w1_r, w3_r], axis=3).reshape(E * H, 2 * F)
    return w13, w2


def _moe_ffn_kernel(gid_ref, valid_ref, x_ref, w13_ref, w2_ref, scale_ref,
                    o_ref, acc_ref, *, tf):
    """Grid = (token_tiles, ffn_tiles).  Each token tile serves exactly one
    expert; the ffn axis is a reduction accumulated into a resident f32
    scratch.  Dead (all-padding) tiles skip the MXU work entirely."""
    i = pl.program_id(0)
    j = pl.program_id(1)

    @pl.when(j == 0)
    def _():
        acc_ref[...] = jnp.zeros_like(acc_ref)

    @pl.when(valid_ref[i] != 0)
    def _():
        x = x_ref[...]                                              # (tm, H)
        # Fused w1/w3 matmul: one weight stream, 2*tf-wide MXU N.
        h13 = jnp.dot(x, w13_ref[...],
                      preferred_element_type=jnp.float32)           # (tm, 2*tf)
        h1 = h13[:, :tf]
        h3 = h13[:, tf:]
        h = (h1 * jax.nn.sigmoid(h1)) * h3                          # silu(h1)*h3
        acc_ref[...] += jnp.dot(h.astype(w2_ref.dtype), w2_ref[...],
                                preferred_element_type=jnp.float32)  # (tm, H)

    @pl.when(j == pl.num_programs(1) - 1)
    def _():
        # Apply the per-token routing weight and cast once, on the last step.
        o_ref[...] = (acc_ref[...] * scale_ref[...]).astype(o_ref.dtype)


def block_sparse_moe(x, gate_w, w13, w2, *, num_experts, ffn_dim, top_k):
    """x: (..., H). gate_w: (E, H). w13/w2 from prepare_moe_weights().
    Returns an x-shaped output."""
    input_shape = x.shape
    H = input_shape[-1]
    E, F, K = num_experts, ffn_dim, top_k
    assert w13.shape == (E * H, 2 * F), "pass weights through prepare_moe_weights()"
    x2d = x.reshape(-1, H)
    T = x2d.shape[0]
    TK = T * K

    # ------------------------- routing (plain JAX glue) -------------------------
    gate_logits = jnp.dot(x2d, gate_w.T)
    probs = jax.nn.softmax(gate_logits.astype(jnp.float32), axis=-1)      # (T, E)
    weights, selected = lax.top_k(probs, K)                               # (T, K)
    weights = weights / jnp.sum(weights, axis=-1, keepdims=True)
    weights = weights.astype(x2d.dtype)

    expert_flat = selected.reshape(-1).astype(jnp.int32)                  # (TK,)
    weight_flat = weights.reshape(-1)                                     # (TK,)
    token_flat = jnp.arange(TK, dtype=jnp.int32) // K                     # (TK,)

    # Sort expanded (token, expert) slots by expert -> contiguous expert groups.
    order = jnp.argsort(expert_flat)
    sorted_expert = expert_flat[order]
    sorted_token = token_flat[order]
    sorted_weight = weight_flat[order]

    wbytes = jnp.dtype(w13.dtype).itemsize
    xbytes = jnp.dtype(x2d.dtype).itemsize
    tf, tm, vmem_limit = _moe_config(F, H, wbytes, xbytes, xbytes, TK=TK)
    n_ftiles = F // tf

    # Pad each expert group to a multiple of the token tile.
    counts = jnp.sum(
        expert_flat[:, None] == jnp.arange(E, dtype=jnp.int32)[None, :],
        axis=0).astype(jnp.int32)                                         # (E,)
    padded_counts = ((counts + tm - 1) // tm) * tm
    padded_ends = jnp.cumsum(padded_counts)
    padded_starts = padded_ends - padded_counts
    group_starts = jnp.cumsum(counts) - counts                            # exclusive

    rank_in_group = jnp.arange(TK, dtype=jnp.int32) - group_starts[sorted_expert]
    pos = padded_starts[sorted_expert] + rank_in_group                    # dest rows

    n_tiles = pl.cdiv(TK, tm) + E                                         # static bound
    P = n_tiles * tm

    x_grouped = jnp.zeros((P, H), dtype=x2d.dtype).at[pos].set(x2d[sorted_token])
    scale_grouped = jnp.zeros((P, 1), dtype=x2d.dtype).at[pos, 0].set(sorted_weight)

    # Per-tile expert id + valid flag (scalar-prefetched to SMEM).
    tile_start = jnp.arange(n_tiles, dtype=jnp.int32) * tm
    group_tile_id = jnp.sum(tile_start[:, None] >= padded_ends[None, :],
                            axis=1).astype(jnp.int32)
    group_tile_id = jnp.minimum(group_tile_id, E - 1)   # dead tiles -> any valid expert
    tile_valid = (tile_start < padded_ends[-1]).astype(jnp.int32)

    cost = pl.CostEstimate(
        flops=6 * P * F * H,
        transcendentals=P * F,
        bytes_accessed=(3 * n_tiles * F * H * wbytes     # streamed expert weights
                        + 3 * P * H * xbytes),           # grouped x read + y write
    )

    kernel = functools.partial(_moe_ffn_kernel, tf=tf)
    # TODO(synk): if profiling shows exposed weight DMA at expert-switch
    #   boundaries, set pipeline_mode=pl.Buffered(3) on the two weight specs.
    # TODO(synk): v7x-only: fp8 weights (per-expert scales) would halve weight
    #   HBM traffic and roughly double MXU rate if model quality permits.
    y_grouped = pl.pallas_call(
        kernel,
        out_shape=jax.ShapeDtypeStruct((P, H), x2d.dtype),
        grid_spec=pltpu.PrefetchScalarGridSpec(
            num_scalar_prefetch=2,
            grid=(n_tiles, n_ftiles),
            in_specs=[
                pl.BlockSpec((tm, H), lambda i, j, gid, valid: (i, 0)),       # tokens
                pl.BlockSpec((H, 2 * tf),
                             lambda i, j, gid, valid: (gid[i], j)),           # fused w1|w3
                pl.BlockSpec((tf, H),
                             lambda i, j, gid, valid: (gid[i] * n_ftiles + j, 0)),  # w2
                pl.BlockSpec((tm, 1), lambda i, j, gid, valid: (i, 0)),       # routing wts
            ],
            out_specs=pl.BlockSpec((tm, H), lambda i, j, gid, valid: (i, 0)),
            scratch_shapes=[pltpu.VMEM((tm, H), jnp.float32)],                # f32 acc
        ),
        compiler_params=pltpu.CompilerParams(
            dimension_semantics=("parallel", "arbitrary"),
            vmem_limit_bytes=int(vmem_limit),
        ),
        cost_estimate=cost,
    )(group_tile_id, tile_valid, x_grouped, w13, w2, scale_grouped)

    # Scatter the already-weighted expert outputs back to token order (sum over top_k).
    out2d = jnp.zeros((T, H), dtype=x2d.dtype).at[sorted_token].add(y_grouped[pos])
    return out2d.reshape(input_shape)


def _reference_moe(x, gate_w, w1, w2, w3, *, num_experts, ffn_dim, top_k):
    """Pure-JAX reference implementing the PyTorch forward semantics."""
    input_shape = x.shape
    x2d = x.reshape(-1, input_shape[-1])
    logits = jnp.dot(x2d, gate_w.T)
    probs = jax.nn.softmax(logits.astype(jnp.float32), axis=-1)
    weights, selected = lax.top_k(probs, top_k)
    weights = weights / jnp.sum(weights, axis=-1, keepdims=True)
    weights = weights.astype(x2d.dtype)

    out = jnp.zeros_like(x2d)
    for k in range(top_k):
        idx = selected[:, k]
        w1_e = w1.reshape(num_experts, ffn_dim, -1)[idx]
        w3_e = w3.reshape(num_experts, ffn_dim, -1)[idx]
        w2_e = w2.reshape(num_experts, ffn_dim, -1)[idx]
        h1 = jnp.einsum("th,tfh->tf", x2d, w1_e)
        h3 = jnp.einsum("th,tfh->tf", x2d, w3_e)
        h = (h1 * jax.nn.sigmoid(h1)) * h3
        y = jnp.einsum("tf,tfh->th", h, w2_e)
        out = out + weights[:, k:k + 1] * y
    return out.reshape(input_shape)


if __name__ == "__main__":
    hidden_dim = 32
    ffn_dim = 64
    num_experts = 4
    top_k = 2
    seq_len = 8

    key = jax.random.PRNGKey(0)
    kx, kg, k1, k2, k3 = jax.random.split(key, 5)

    x = jax.random.normal(kx, (seq_len, hidden_dim), dtype=jnp.float32)
    gate_w = jax.random.normal(kg, (num_experts, hidden_dim), dtype=jnp.float32) * 0.1
    w1 = jax.random.normal(k1, (num_experts * ffn_dim, hidden_dim), dtype=jnp.float32) * 0.05
    w2 = jax.random.normal(k2, (num_experts * ffn_dim, hidden_dim), dtype=jnp.float32) * 0.05
    w3 = jax.random.normal(k3, (num_experts * ffn_dim, hidden_dim), dtype=jnp.float32) * 0.05

    # One-time weight relayout (would be done at weight-load time in a model).
    w13, w2p = prepare_moe_weights(w1, w2, w3, num_experts=num_experts, ffn_dim=ffn_dim)

    out = block_sparse_moe(
        x, gate_w, w13, w2p,
        num_experts=num_experts, ffn_dim=ffn_dim, top_k=top_k,
    )
    out = jax.block_until_ready(out)

    ref = _reference_moe(
        x, gate_w, w1, w2, w3,
        num_experts=num_experts, ffn_dim=ffn_dim, top_k=top_k,
    )
    assert out.shape == x.shape
    assert jnp.allclose(out, ref, rtol=1e-4, atol=1e-4), "mismatch vs reference"

    print("KERNEL_OK")
</pallas_src>

<mosaic_0001>
module attributes {stable_mosaic.version = 11 : i64} {
  func.func @_moe_ffn_kernel(%arg0: i32, %arg1: i32, %arg2: memref<5xi32, #tpu.memory_space<smem>>, %arg3: memref<5xi32, #tpu.memory_space<smem>>, %arg4: memref<16x32xf32, #tpu.memory_space<vmem>>, %arg5: memref<32x128xf32, #tpu.memory_space<vmem>>, %arg6: memref<64x32xf32, #tpu.memory_space<vmem>>, %arg7: memref<16x1xf32, #tpu.memory_space<vmem>>, %arg8: memref<16x32xf32, #tpu.memory_space<vmem>>, %arg9: memref<16x32xf32, #tpu.memory_space<vmem>>) attributes {dimension_semantics = [#tpu.dimension_semantics<parallel>, #tpu.dimension_semantics<arbitrary>], iteration_bounds = array<i64: 5, 1>, scalar_prefetch = 2 : i64, scratch_operands = 1 : i64, tpu.core_type = #tpu.core_type<tc>, window_params = [{transform_indices = @transform_0, window_bounds = array<i64: 16, 32>}, {transform_indices = @transform_1, window_bounds = array<i64: 32, 128>}, {transform_indices = @transform_2, window_bounds = array<i64: 64, 32>}, {transform_indices = @transform_3, window_bounds = array<i64: 16, 1>}, {transform_indices = @transform_4, window_bounds = array<i64: 16, 32>}]} {
    %c0_i32 = arith.constant 0 : i32
    %0 = arith.cmpi eq, %arg1, %c0_i32 : i32
    %1 = arith.extui %0 : i1 to i32
    %c0_i32_0 = arith.constant 0 : i32
    %2 = arith.cmpi ne, %1, %c0_i32_0 : i32
    scf.if %2 {
      %cst = arith.constant 0.000000e+00 : f32
      %11 = vector.broadcast %cst : f32 to vector<16x32xf32>
      %c0 = arith.constant 0 : index
      %c0_5 = arith.constant 0 : index
      %12 = vector.load %arg9[%c0, %c0_5] : memref<16x32xf32, #tpu.memory_space<vmem>>, vector<16x32xf32>
      tpu.vector_store %arg9[%c0, %c0_5], %11 {strides = array<i32>} : memref<16x32xf32, #tpu.memory_space<vmem>>, vector<16x32xf32>,
    } else {
    }
    %3 = arith.index_cast %arg0 : i32 to index
    %4 = memref.load %arg3[%3] : memref<5xi32, #tpu.memory_space<smem>>
    %c0_i32_1 = arith.constant 0 : i32
    %5 = arith.cmpi ne, %4, %c0_i32_1 : i32
    %6 = arith.extui %5 : i1 to i32
    %c0_i32_2 = arith.constant 0 : i32
    %7 = arith.cmpi ne, %6, %c0_i32_2 : i32
    scf.if %7 {
      %c0 = arith.constant 0 : index
      %c0_5 = arith.constant 0 : index
      %11 = vector.load %arg4[%c0, %c0_5] : memref<16x32xf32, #tpu.memory_space<vmem>>, vector<16x32xf32>
      %c0_6 = arith.constant 0 : index
      %c0_7 = arith.constant 0 : index
      %12 = vector.load %arg5[%c0_6, %c0_7] : memref<32x128xf32, #tpu.memory_space<vmem>>, vector<32x128xf32>
      %cst = arith.constant dense<0.000000e+00> : vector<16x128xf32>
      %13 = tpu.matmul %11, %12, %cst {dimension_numbers = #tpu.dot_dimension_numbers<[1], [0], [0], [1], [0, 0, 1, 1], [], []>} : vector<16x32xf32>, vector<32x128xf32>, vector<16x128xf32> -> vector<16x128xf32>
      %14 = vector.extract_strided_slice %13 {offsets = [0, 0], sizes = [16, 64], strides = [1, 1]} : vector<16x128xf32> to vector<16x64xf32>
      %15 = vector.extract_strided_slice %13 {offsets = [0, 64], sizes = [16, 64], strides = [1, 1]} : vector<16x128xf32> to vector<16x64xf32>
      %16 = arith.negf %14 : vector<16x64xf32>
      %17 = math.exp %16 : vector<16x64xf32>
      %cst_8 = arith.constant 1.000000e+00 : f32
      %18 = vector.broadcast %cst_8 : f32 to vector<16x64xf32>
      %19 = arith.addf %18, %17 : vector<16x64xf32>
      %20 = arith.divf %18, %19 : vector<16x64xf32>
      %21 = arith.mulf %14, %20 : vector<16x64xf32>
      %22 = arith.mulf %21, %15 : vector<16x64xf32>
      %c0_9 = arith.constant 0 : index
      %c0_10 = arith.constant 0 : index
      %23 = vector.load %arg9[%c0_9, %c0_10] : memref<16x32xf32, #tpu.memory_space<vmem>>, vector<16x32xf32>
      %c0_11 = arith.constant 0 : index
      %c0_12 = arith.constant 0 : index
      %24 = vector.load %arg6[%c0_11, %c0_12] : memref<64x32xf32, #tpu.memory_space<vmem>>, vector<64x32xf32>
      %cst_13 = arith.constant dense<0.000000e+00> : vector<16x32xf32>
      %25 = tpu.matmul %22, %24, %cst_13 {dimension_numbers = #tpu.dot_dimension_numbers<[1], [0], [0], [1], [0, 0, 1, 1], [], []>} : vector<16x64xf32>, vector<64x32xf32>, vector<16x32xf32> -> vector<16x32xf32>
      %26 = arith.addf %23, %25 : vector<16x32xf32>
      %c0_14 = arith.constant 0 : index
      %c0_15 = arith.constant 0 : index
      %27 = vector.load %arg9[%c0_14, %c0_15] : memref<16x32xf32, #tpu.memory_space<vmem>>, vector<16x32xf32>
      tpu.vector_store %arg9[%c0_14, %c0_15], %26 {strides = array<i32>} : memref<16x32xf32, #tpu.memory_space<vmem>>, vector<16x32xf32>,
    } else {
    }
    %c0_i32_3 = arith.constant 0 : i32
    %8 = arith.cmpi eq, %arg1, %c0_i32_3 : i32
    %9 = arith.extui %8 : i1 to i32
    %c0_i32_4 = arith.constant 0 : i32
    %10 = arith.cmpi ne, %9, %c0_i32_4 : i32
    scf.if %10 {
      %c0 = arith.constant 0 : index
      %c0_5 = arith.constant 0 : index
      %11 = vector.load %arg9[%c0, %c0_5] : memref<16x32xf32, #tpu.memory_space<vmem>>, vector<16x32xf32>
      %c0_6 = arith.constant 0 : index
      %c0_7 = arith.constant 0 : index
      %12 = vector.load %arg7[%c0_6, %c0_7] : memref<16x1xf32, #tpu.memory_space<vmem>>, vector<16x1xf32>
      %13 = vector.broadcast %12 : vector<16x1xf32> to vector<16x32xf32>
      %14 = arith.mulf %11, %13 : vector<16x32xf32>
      %c0_8 = arith.constant 0 : index
      %c0_9 = arith.constant 0 : index
      %15 = vector.load %arg8[%c0_8, %c0_9] : memref<16x32xf32, #tpu.memory_space<vmem>>, vector<16x32xf32>
      tpu.vector_store %arg8[%c0_8, %c0_9], %14 {strides = array<i32>} : memref<16x32xf32, #tpu.memory_space<vmem>>, vector<16x32xf32>,
    } else {
    }
    return
  }
  func.func @transform_0(%arg0: i32, %arg1: i32, %arg2: memref<5xi32, #tpu.memory_space<smem>>, %arg3: memref<5xi32, #tpu.memory_space<smem>>) -> (i32, i32) {
    %c0_i32 = arith.constant 0 : i32
    %c0_i32_0 = arith.constant 0 : i32
    return %arg0, %c0_i32 : i32, i32
  }
  func.func @transform_1(%arg0: i32, %arg1: i32, %arg2: memref<5xi32, #tpu.memory_space<smem>>, %arg3: memref<5xi32, #tpu.memory_space<smem>>) -> (i32, i32) {
    %0 = arith.index_cast %arg0 : i32 to index
    %1 = memref.load %arg2[%0] : memref<5xi32, #tpu.memory_space<smem>>
    %c0_i32 = arith.constant 0 : i32
    return %1, %arg1 : i32, i32
  }
  func.func @transform_2(%arg0: i32, %arg1: i32, %arg2: memref<5xi32, #tpu.memory_space<smem>>, %arg3: memref<5xi32, #tpu.memory_space<smem>>) -> (i32, i32) {
    %0 = arith.index_cast %arg0 : i32 to index
    %1 = memref.load %arg2[%0] : memref<5xi32, #tpu.memory_space<smem>>
    %c1_i32 = arith.constant 1 : i32
    %2 = arith.muli %1, %c1_i32 : i32
    %3 = arith.addi %2, %arg1 : i32
    %c0_i32 = arith.constant 0 : i32
    %c0_i32_0 = arith.constant 0 : i32
    return %3, %c0_i32 : i32, i32
  }
  func.func @transform_3(%arg0: i32, %arg1: i32, %arg2: memref<5xi32, #tpu.memory_space<smem>>, %arg3: memref<5xi32, #tpu.memory_space<smem>>) -> (i32, i32) {
    %c0_i32 = arith.constant 0 : i32
    %c0_i32_0 = arith.constant 0 : i32
    return %arg0, %c0_i32 : i32, i32
  }
  func.func @transform_4(%arg0: i32, %arg1: i32, %arg2: memref<5xi32, #tpu.memory_space<smem>>, %arg3: memref<5xi32, #tpu.memory_space<smem>>) -> (i32, i32) {
    %c0_i32 = arith.constant 0 : i32
    %c0_i32_0 = arith.constant 0 : i32
    return %arg0, %c0_i32 : i32, i32
  }
}

</mosaic_0001>

<bundles_post_ra>
// kernel: tpu_custom_call.1
= control target key start
LH: loop header
LB: loop body
LE: loop exit
PB: predicated region body
PF: predicated region fallthrough
CT: control target
= control target key end

     0   :  { %s1880_s0 = inlined_call_operand.hbm [shape: s32[5], index: 0, kind: input, shape index: {}]   ;;  %s1881_s2 = inlined_call_operand.hbm [shape: f32[80,32], index: 2, kind: input, shape index: {}]   ;;  %s1882_s3 = inlined_call_operand.hbm [shape: f32[128,128], index: 3, kind: input, shape index: {}]   ;;  %s1883_s4 = inlined_call_operand.hbm [shape: f32[256,32], index: 4, kind: input, shape index: {}]   ;;  %s1884_s5 = inlined_call_operand.hbm [shape: f32[80,1], index: 5, kind: input, shape index: {}]   ;;  %s1885_s6 = inlined_call_operand.hbm [shape: f32[80,32], index: 6, kind: output, shape index: {}]   ;;  %s1886_s1 = inlined_call_operand.hbm [shape: s32[5], index: 1, kind: input, shape index: {}]  }
   0x1   :  { %1912 = sst [smem:[#allocation38_spill]] %s1881_s2  ;;  %s1039_s23 = scalar_lea.hbm %s1880_s0, 16 }
   0x2   :  { %1913 = sst [smem:[#allocation39_spill]] %s1882_s3  ;;  %p1040_p0 = scmp.ne.s32.totalorder %s1880_s0, %s1039_s23 }
   0x3   :  { %1914 = sst [smem:[#allocation40_spill]] %s1885_s6  ;;  %p1043_p1 = scmp.lt.u32.totalorder %s1039_s23, %s1880_s0 }
   0x5   :  { %p1045_p2 = pnand %p1043_p1, %p1040_p0 }
   0x7   :  { %1048 = shalt.err (!%p1045_p2)  }
   0x8   :  { %s1325_s28 = smov [#allocation4]   ;;  %s1049_s9 = scalar_lea.hbm %s1886_s1, 16 }
   0x9   :  { %12 = dma.hbm_to_smem %s1880_s0, 16, %s1325_s28, [#allocation3] }
   0xa   :  { %p1050_p3 = scmp.ne.s32.totalorder %s1886_s1, %s1049_s9  ;;  %p1053_p4 = scmp.lt.u32.totalorder %s1049_s9, %s1886_s1 }
   0xc   :  { %p1055_p5 = pnand %p1053_p4, %p1050_p3 }
   0xe   :  { %1058 = shalt.err (!%p1055_p5)  }
   0xf   :  { %s1326_s14 = smov [#allocation5]  }
  0x10   :  { %14 = dma.hbm_to_smem %s1886_s1, 16, %s1326_s14, [#allocation3] }
  0x11   :  { %1255 = dma.done.wait [#allocation3], 32 }
  0x12   :  { %1256 = vsyncadd [#allocation3], 4294967264 }
  0x13   :  { %16 = sfence }
  0x14   :  { %17 = vsyncpa [#allocation7], 0 }
  0x15   :  { %19 = vsyncpa [#allocation7 + $0x1], 0 }
  0x16   :  { %20 = vsyncpa [#allocation10], 0 }
  0x17   :  { %22 = vsyncpa [#allocation10 + $0x1], 0 }
  0x18   :  { %23 = vsyncpa [#allocation13], 0 }
  0x19   :  { %25 = vsyncpa [#allocation13 + $0x1], 0 }
  0x1a   :  { %26 = vsyncpa [#allocation8], 0 }
  0x1b   :  { %28 = vsyncpa [#allocation8 + $0x1], 0  ;;  %s1398_s0 = smov 0   ;;  %s1400_s17 = smov 0  }
  0x1c   :  { %s1402_s18 = smov 0   ;;  %s1404_s19 = smov 0  }
  0x1d   :  { %s1406_s1 = smov 0   ;;  %s1408_s20 = smov 0  }
  0x1e   :  { %s1410_s21 = smov 0   ;;  %s1412_s22 = smov 0  }
  0x1f   :  { %s1414_s23 = smov 0   ;;  %s1416_s24 = smov 0  }
  0x20   :  { %s1418_s25 = smov 0   ;;  %s1420_s26 = smov 0  }
  0x21 LB: > { %1915 = sst [smem:[#allocation25_spill]] %s1287_s18  ;;  %s1457_s27 = sadd.s32 4294967295, %s1323_s26   ;;  %s1323_s26 = sphi %s1420_s26, %s34_s26   ;;  %s1319_s25 = sphi %s1418_s25, %s1973_s25   ;;  %s1315_s24 = sphi %s1416_s24, %s1972_s24   ;;  %s1311_s23 = sphi %s1414_s23, %s1980_s23   ;;  %s1307_s22 = sphi %s1412_s22, %s1979_s22   ;;  %s1303_s21 = sphi %s1410_s21, %s1978_s21   ;;  %s1299_s20 = sphi %s1408_s20, %s1969_s20   ;;  %s1295_s1 = sphi %s1406_s1, %s1977_s1   ;;  %s1291_s19 = sphi %s1404_s19, %s1976_s19   ;;  %s1287_s18 = sphi %s1402_s18, %s1967_s18   ;;  %s1283_s17 = sphi %s1400_s17, %s1975_s17   ;;  %s1279_s0 = sphi %s1398_s0, %s1974_s0  }
  0x22   : > { %1916 = sst [smem:[#allocation26_spill]] %s1299_s20  ;;  %s46_s28 = sadd.s32 1, %s1319_s25 }
  0x23   : > { %1917 = sst [smem:[#allocation27_spill]] %s1303_s21  ;;  %p48_p6 = scmp.ge.s32.totalorder %s46_s28, 5 }
  0x24   : > { %1918 = sst [smem:[#allocation28_spill]] %s1311_s23  ;;  %p1890_p7 = scmp.eq.s32.totalorder %s1323_s26, 0 }
  0x25   : > { %1919 = sst [smem:[#allocation29_spill]] %s1315_s24  ;;  %p1889_p8 = scmp.eq.s32.totalorder %s1457_s27, 0 }
  0x26   : > { %1920 = sst [smem:[#allocation30_spill]] %s1319_s25  ;;  %s1982_s28 = smov (%p48_p6, %s46_s28), 0 }
  0x27   : > { %1921 = sst [smem:[#allocation31_spill]] %s1323_s26  ;;  %s83_s30 = sadd.s32 1, %s1299_s20 }
  0x28   : > { %s76_s29 = sld [smem:[#allocation4 + %s1319_s25]]  ;;  %p90_p9 = scmp.ne.s32.totalorder %s1299_s20, %s1295_s1 }
  0x29   : > { %1922 = sst [smem:[#allocation32_spill]] %s1982_s28  ;;  %p96_p10 = scmp.ne.s32.totalorder %s1295_s1, %s1291_s19 }
  0x2a   : > { %s77_s7 = sld [smem:[#allocation4 + %s1982_s28]]  ;;  %p1472_p11 = por %p90_p9, %p1890_p7 }
  0x2b   : > { %p1478_p12 = por %p96_p10, %p1889_p8  ;;  %p1888_p13 = scmp.lt.s32.totalorder %s1323_s26, 5 }
  0x2c   : > { %s223_s10 = sand.u32 1, %s1323_s26   ;;  %s225_s11 = sand.u32 1, %s1299_s20  }
  0x2d   : > { %s1924_s9 = scalar_select %p1478_p12, 1, 0 }
  0x2e   : > { %s786_s12 = sshll.u32 %s225_s11, 5  ;;  %p1503_p1 = pnand %p1888_p13, %p1472_p11 }
  0x2f   : > { %s227_s14 = scalar_lea.vmem [#allocation9], %s786_s12  ;;  %p795_p2 = scmp.ge.s32.totalorder %s1323_s26, 1 }
  0x30   : > { %s78_s13 = ssub.s32 %s76_s29, %s77_s7  ;;  %s236_s15 = sshll.u32 %s227_s14, 4  ;;  %s1497_s15 = int_to_ptr.vmem [resolvable:$true] %s236_s15 }
  0x31   : > { %p81_p0 = scmp.eq.s32.totalorder %s78_s13, 0  ;;  %p288_p3 = scmp.lt.s32.totalorder %s1323_s26, 6 }
  0x32   : > { %s889_s16 = scalar_select %p1472_p11, [#allocation4], [#allocation15] }
  0x33   : > { %s1488_s19 = scalar_select %p81_p0, %s1299_s20, %s83_s30  }
  0x34   : > { %s890_s6 = scalar_select %p1472_p11, %s1319_s25, 0 }
  0x35   : > { %1925 = sst [smem:[#allocation33_spill]] %s1488_s19  ;;  %s1984_s16 = smov (!%p1888_p13, %s889_s16), [#allocation17] }
  0x36   : > { %s1986_s6 = smov (!%p1888_p13, %s890_s6), 0  ;;  %p1509_p4 = pnand %p795_p2, %p288_p3 }
  0x37   : > { %s228_s7 = sld [smem:[%s1984_s16 + %s1986_s6]]  ;;  %s780_s8 = sadd.s32 4294967294, %s1323_s26  }
  0x38   : > { %s1927_s30 = scalar_select %p1509_p4, 1, 0 }
  0x39   : > { %s1928_s3 = sld [smem:[#allocation39_spill]]  ;;  %s1519_s19 = scalar_lea.sflag [#allocation10], %s223_s10 }
  0x3a   : > { %p1061_p6 = pneg %p1503_p1 }
  0x3d   : > { %s814_s11 = sshll.u32 %s228_s7, 9 }
  0x3f   : > { %s1516_s14 = scalar_lea.hbm %s1928_s3, %s814_s11  ;;  %s1064_s11 = scalar_lea.hbm %s1928_s3, 2048 }
  0x40   : > { %s1059_s6 = scalar_lea.hbm %s1516_s14, 512  ;;  %p1065_p11 = scmp.lt.u32.totalorder %s1516_s14, %s1928_s3 }
  0x41   : > { %p1060_p5 = scmp.ne.s32.totalorder %s1516_s14, %s1059_s6  ;;  %p1066_p0 = scmp.lt.u32.totalorder %s1064_s11, %s1059_s6 }
  0x42   : > { %p1068_p3 = scmp.lt.u32.totalorder %s1059_s6, %s1516_s14 }
  0x43   : > { %p1062_p9 = pnand %p1061_p6, %p1060_p5  ;;  %p1067_p2 = por %p1066_p0, %p1065_p11 }
  0x45   : > { %p1063_p10 = pneg %p1062_p9  ;;  %p1069_p13 = por %p1068_p3, %p1067_p2 }
  0x47   : > { %p1070_p8 = pnand %p1069_p13, %p1063_p10 }
  0x49   : > { %1073 = shalt.err (!%p1070_p8)
}
  0x4a   : > { %s1074_s10 = scalar_lea.vmem %s1497_s15, 512  ;;  %s1327_s16 = smov [#allocation9]  }
  0x4b   : > { %p1075_p5 = scmp.ne.s32.totalorder %s1497_s15, %s1074_s10  ;;  %s1079_s7 = sshll.u32 %s1327_s16, 4  ;;  %s1080_s7 = int_to_ptr.vmem [resolvable:$false] %s1079_s7 }
  0x4c   : > { %s1081_s12 = scalar_lea.vmem %s1080_s7, 1024  ;;  %p1082_p12 = scmp.lt.s32.totalorder %s1497_s15, %s1080_s7 }
  0x4d   : > { %p1077_p9 = pnand %p1075_p5, %p1061_p6  ;;  %p1083_p11 = scmp.lt.s32.totalorder %s1081_s12, %s1074_s10 }
  0x4f   : > { %p1078_p7 = pneg %p1077_p9  ;;  %p1084_p0 = por %p1083_p11, %p1082_p12 }
  0x51   : > { %p1085_p2 = pnand %p1084_p0, %p1078_p7 }
  0x53   : > { %1088 = shalt.err (!%p1085_p2)
}
  0x54   : > { %s1892_s6 = smov 128   ;;  %s1894_s11 = smov 8  }
  0x55   : > { %910 = dma.hbm_to_vmem [thread:$0]  (!%p1503_p1), %s1516_s14, 512, %s1497_s15, %s1519_s19, %s1892_s6, %s1892_s6, %s1894_s11  }
  0x56   : > { %s50_s13 = ssub.s32 %s1319_s25, %s1982_s28  ;;  %s53_s10 = sadd.s32 1, %s1311_s23 }
  0x57   : > { %p51_p7 = scmp.eq.s32.totalorder %s50_s13, 0  ;;  %p60_p8 = scmp.ne.s32.totalorder %s1311_s23, %s1307_s22 }
  0x58   : > { %p66_p12 = scmp.ne.s32.totalorder %s1307_s22, %s1303_s21  ;;  %p176_p13 = scmp.eq.s32.totalorder %s1457_s27, 4 }
  0x59   : > { %s1559_s16 = scalar_select %p51_p7, %s1311_s23, %s53_s10  }
  0x5a   : > { %p1930_p6 = scmp.eq.s32.totalorder %s1323_s26, 0  ;;  %p1931_p3 = scmp.eq.s32.totalorder %s1457_s27, 0 }
  0x5b   : > { %1929 = sst [smem:[#allocation34_spill]] %s1559_s16  ;;  %p1569_p9 = por %p176_p13, %p60_p8 }
  0x5c   : > { %p62_p10 = por %p1930_p6, %p60_p8  ;;  %p1565_p5 = por %p1931_p3, %p66_p12 }
  0x5d   : > { %s1933_s29 = scalar_select %p1569_p9, 1, 0 }
  0x5e   : > { %s1932_s7 = scalar_select %p1565_p5, 1, 0 }
  0x5f   : > { %1934 = sst [smem:[#allocation35_spill]] %s1933_s29  ;;  %p182_p1 = scmp.eq.s32.totalorder %s780_s8, 4 }
  0x60   : > { %s1576_s15 = sand.u32 1, %s1311_s23   ;;  %s1897_s14 = sshll.u32 %s1319_s25, 8 }
  0x61   : > { %p1579_p11 = por %p182_p1, %p66_p12  ;;  %s1903_s13 = sshll.u32 %s1576_s15, 4 }
  0x62   : > { %s1937_s2 = sld [smem:[#allocation38_spill]]  ;;  %p1938_p0 = scmp.lt.s32.totalorder %s1323_s26, 5 }
  0x63   : > { %s1935_s12 = scalar_select %p1579_p11, 1, 0 }
  0x64   : > { %p1593_p2 = pnand %p1938_p0, %p62_p10  ;;  %s206_s3 = scalar_lea.vmem [#allocation6], %s1903_s13 }
  0x65   : > { %1936 = sst [smem:[#allocation36_spill]] %s1935_s12  ;;  %s213_s16 = sshll.u32 %s206_s3, 4  ;;  %s1599_s16 = int_to_ptr.vmem [resolvable:$true] %s213_s16 }
  0x66   : > { %s203_s23 = scalar_lea.sflag [#allocation7], %s1576_s15  ;;  %p1091_p8 = pneg %p1593_p2 }
  0x68   : > { %s1589_s11 = scalar_lea.hbm %s1937_s2, %s1897_s14  ;;  %s1094_s20 = scalar_lea.hbm %s1937_s2, 1280 }
  0x69   : > { %s1089_s6 = scalar_lea.hbm %s1589_s11, 256  ;;  %p1095_p6 = scmp.lt.u32.totalorder %s1589_s11, %s1937_s2 }
  0x6a   : > { %p1090_p7 = scmp.ne.s32.totalorder %s1589_s11, %s1089_s6  ;;  %p1096_p10 = scmp.lt.u32.totalorder %s1094_s20, %s1089_s6 }
  0x6b   : > { %p1098_p1 = scmp.lt.u32.totalorder %s1089_s6, %s1589_s11 }
  0x6c   : > { %p1092_p12 = pnand %p1091_p8, %p1090_p7  ;;  %p1097_p3 = por %p1096_p10, %p1095_p6 }
  0x6e   : > { %p1093_p13 = pneg %p1092_p12  ;;  %p1099_p0 = por %p1098_p1, %p1097_p3 }
  0x70   : > { %p1100_p11 = pnand %p1099_p0, %p1093_p13 }
  0x72   : > { %1103 = shalt.err (!%p1100_p11)
}
  0x73   : > { %s1104_s3 = scalar_lea.vmem %s1599_s16, 256  ;;  %s1330_s14 = smov [#allocation6]  }
  0x74   : > { %p1105_p7 = scmp.ne.s32.totalorder %s1599_s16, %s1104_s3  ;;  %s1109_s10 = sshll.u32 %s1330_s14, 4  ;;  %s1110_s10 = int_to_ptr.vmem [resolvable:$false] %s1109_s10 }
  0x75   : > { %s1111_s21 = scalar_lea.vmem %s1110_s10, 512  ;;  %p1112_p5 = scmp.lt.s32.totalorder %s1599_s16, %s1110_s10 }
  0x76   : > { %p1107_p12 = pnand %p1105_p7, %p1091_p8  ;;  %p1113_p6 = scmp.lt.s32.totalorder %s1111_s21, %s1104_s3 }
  0x78   : > { %p1108_p9 = pneg %p1107_p12  ;;  %p1114_p10 = por %p1113_p6, %p1112_p5 }
  0x7a   : > { %p1115_p3 = pnand %p1114_p10, %p1108_p9 }
  0x7c   : > { %1118 = shalt.err (!%p1115_p3)
}
  0x7d   : > { %s1940_s20 = smov 8   ;;  %s1941_s12 = smov 128  }
  0x7e   : > { %905 = dma.hbm_to_vmem [thread:$0]  (!%p1593_p2), %s1589_s11, 256, %s1599_s16, %s203_s23, %s1941_s12, %s1941_s12, %s1940_s20  }
  0x7f   : > { %s106_s6 = sld [smem:[#allocation4 + %s1319_s25]]  ;;  %p120_p5 = scmp.ne.s32.totalorder %s1287_s18, %s1283_s17 }
  0x80   : > { %s108_s3 = sld [smem:[#allocation4 + %s1982_s28]]  ;;  %p126_p9 = scmp.ne.s32.totalorder %s1283_s17, %s1279_s0 }
  0x81   : > { %s248_s14 = sand.u32 1, %s1287_s18   ;;  %s113_s10 = sadd.s32 1, %s1287_s18 }
  0x82   : > { %p1942_p11 = scmp.eq.s32.totalorder %s1457_s27, 0  ;;  %p1944_p1 = scmp.eq.s32.totalorder %s1323_s26, 0 }
  0x83   : > { %s789_s13 = sshll.u32 %s248_s14, 6  ;;  %p1945_p12 = scmp.lt.s32.totalorder %s1323_s26, 5 }
  0x84   : > { %p1642_p13 = por %p126_p9, %p1942_p11  ;;  %p122_p0 = por %p120_p5, %p1944_p1 }
  0x85   : > { %p1948_p10 = pmov %p1945_p12  ;;  %s1950_s28 = sshll.u32 %s1319_s25, 8 }
  0x86   : > { %s1943_s21 = scalar_select %p1642_p13, 1, 0 }
  0x87   : > { %s110_s23 = ssub.s32 %s106_s6, %s108_s3  ;;  %p1650_p6 = pnand %p1945_p12, %p122_p0 }
  0x88   : > { %p111_p7 = scmp.eq.s32.totalorder %s110_s23, 0  ;;  %p1949_p3 = pmov %p1948_p10 }
  0x89   : > { %s892_s0 = scalar_select %p122_p0, [#allocation4], [#allocation16] }
  0x8a   : > { %s1655_s16 = scalar_select %p111_p7, %s1287_s18, %s113_s10  }
  0x8b   : > { %s893_s2 = scalar_select %p122_p0, %s1319_s25, 0 }
  0x8c   : > { %1947 = sst [smem:[#allocation37_spill]] %s1655_s16  ;;  %s1988_s0 = smov (!%p1948_p10, %s892_s0), [#allocation18] }
  0x8d   : > { %s1990_s2 = smov (!%p1949_p3, %s893_s2), 0  ;;  %s1667_s6 = scalar_lea.hbm %s1884_s5, %s1950_s28 }
  0x8e   : > { %s1669_s3 = sld [smem:[%s1988_s0 + %s1990_s2]]  ;;  %s1951_s23 = sshll.u32 %s1576_s15, 4 }
  0x8f   : > { %s273_s10 = scalar_lea.vmem [#allocation12], %s1951_s23  ;;  %s250_s18 = scalar_lea.vmem [#allocation11], %s789_s13 }
  0x90   : > { %s280_s16 = sshll.u32 %s273_s10, 4  ;;  %s1673_s24 = sshll.u32 %s250_s18, 4  ;;  %s1675_s16 = int_to_ptr.vmem [resolvable:$true] %s280_s16  ;;  %s1707_s24 = int_to_ptr.vmem [resolvable:$true] %s1673_s24 }
  0x91   : > { %s270_s25 = scalar_lea.sflag [#allocation13], %s1576_s15  ;;  %s1119_s26 = scalar_lea.hbm %s1667_s6, 256 }
  0x92   : > { %p1120_p5 = scmp.ne.s32.totalorder %s1667_s6, %s1119_s26  ;;  %s1124_s2 = scalar_lea.hbm %s1884_s5, 1280 }
  0x93   : > { %p1125_p1 = scmp.lt.u32.totalorder %s1667_s6, %s1884_s5  ;;  %p1126_p0 = scmp.lt.u32.totalorder %s1124_s2, %s1119_s26 }
  0x94   : > { %p1122_p9 = pnand %p1120_p5, %p1091_p8  ;;  %p1128_p12 = scmp.lt.u32.totalorder %s1119_s26, %s1667_s6 }
  0x95   : > { %p1127_p7 = por %p1126_p0, %p1125_p1 }
  0x96   : > { %p1123_p11 = pneg %p1122_p9 }
  0x97   : > { %p1129_p10 = por %p1128_p12, %p1127_p7 }
  0x99   : > { %p1130_p3 = pnand %p1129_p10, %p1123_p11 }
  0x9b   : > { %1133 = shalt.err (!%p1130_p3)
}
  0x9c   : > { %s1134_s18 = scalar_lea.vmem %s1675_s16, 256  ;;  %s1331_s13 = smov [#allocation12]  }
  0x9d   : > { %p1135_p5 = scmp.ne.s32.totalorder %s1675_s16, %s1134_s18  ;;  %s1139_s23 = sshll.u32 %s1331_s13, 4  ;;  %s1140_s23 = int_to_ptr.vmem [resolvable:$false] %s1139_s23 }
  0x9e   : > { %s1141_s10 = scalar_lea.vmem %s1140_s23, 512  ;;  %p1142_p4 = scmp.lt.s32.totalorder %s1675_s16, %s1140_s23 }
  0x9f   : > { %p1137_p9 = pnand %p1135_p5, %p1091_p8  ;;  %p1143_p1 = scmp.lt.s32.totalorder %s1141_s10, %s1134_s18 }
  0xa1   : > { %p1138_p13 = pneg %p1137_p9  ;;  %p1144_p0 = por %p1143_p1, %p1142_p4 }
  0xa3   : > { %p1145_p7 = pnand %p1144_p0, %p1138_p13 }
  0xa5   : > { %1148 = shalt.err (!%p1145_p7)
}
  0xa6   : > { %918 = dma.hbm_to_vmem [thread:$0]  (!%p1593_p2), %s1667_s6, 256, %s1675_s16, %s270_s25, %s1941_s12, %s1941_s12, %s1940_s20  }
  0xa7   : > { %s815_s26 = sshll.u32 %s1669_s3, 10  ;;  %p1151_p8 = pneg %p1650_p6 }
  0xa8   : > { %s1713_s2 = scalar_lea.hbm %s1883_s4, %s815_s26  ;;  %s1154_s16 = scalar_lea.hbm %s1883_s4, 4096 }
  0xa9   : > { %s1149_s15 = scalar_lea.hbm %s1713_s2, 1024  ;;  %p1155_p11 = scmp.lt.u32.totalorder %s1713_s2, %s1883_s4 }
  0xaa   : > { %p1150_p4 = scmp.ne.s32.totalorder %s1713_s2, %s1149_s15  ;;  %p1156_p12 = scmp.lt.u32.totalorder %s1154_s16, %s1149_s15 }
  0xab   : > { %p1158_p3 = scmp.lt.u32.totalorder %s1149_s15, %s1713_s2 }
  0xac   : > { %p1152_p13 = pnand %p1151_p8, %p1150_p4  ;;  %p1157_p10 = por %p1156_p12, %p1155_p11 }
  0xae   : > { %p1153_p2 = pneg %p1152_p13  ;;  %p1159_p5 = por %p1158_p3, %p1157_p10 }
  0xb0   : > { %p1160_p9 = pnand %p1159_p5, %p1153_p2 }
  0xb2   : > { %1163 = shalt.err (!%p1160_p9)
}
  0xb3   : > { %s1164_s0 = scalar_lea.vmem %s1707_s24, 1024  ;;  %s1332_s14 = smov [#allocation11]  }
  0xb4   : > { %p1165_p1 = scmp.ne.s32.totalorder %s1707_s24, %s1164_s0  ;;  %s1169_s18 = sshll.u32 %s1332_s14, 4  ;;  %s1170_s18 = int_to_ptr.vmem [resolvable:$false] %s1169_s18 }
  0xb5   : > { %s1171_s13 = scalar_lea.vmem %s1170_s18, 2048  ;;  %p1172_p4 = scmp.lt.s32.totalorder %s1707_s24, %s1170_s18 }
  0xb6   : > { %p1167_p0 = pnand %p1165_p1, %p1151_p8  ;;  %p1173_p13 = scmp.lt.s32.totalorder %s1171_s13, %s1164_s0 }
  0xb8   : > { %p1168_p7 = pneg %p1167_p0  ;;  %p1174_p11 = por %p1173_p13, %p1172_p4 }
  0xba   : > { %p1175_p12 = pnand %p1174_p11, %p1168_p7 }
  0xbc   : > { %1178 = shalt.err (!%p1175_p12)
}
  0xbd   : > { %915 = dma.hbm_to_vmem [thread:$0]  (!%p1650_p6), %s1713_s2, 1024, %s1707_s24, %s1519_s19, %s1941_s12, %s1941_s12, %s1940_s20  }
  0xbe   : > { %p1952_p8 = scmp.ne.s32.totalorder %s1927_s30, 0 }
  0xbf   : > { %s1747_s23 = sand.u32 (!%p1952_p8), 1, %s1307_s22   ;;  %p1953_p2 = scmp.ne.s32.totalorder (!%p1952_p8), %s1932_s7, 0 }
  0xc0   : > { %292 = sbr.rel (%p1952_p8) target bundleno = 936 (0x3a8), region = 36  ;;  %s1750_s10 = sshll.u32 (!%p1952_p8), %s1747_s23, 4 }
  0xc1   : > { %s295_s11 = scalar_lea.sflag (!%p1952_p8), [#allocation7], %s1747_s23  ;;  %s298_s26 = scalar_lea.vmem (!%p1952_p8), [#allocation6], %s1750_s10 }
  0xc7   : > { %1258 = dma.done.wait (%p1953_p2), %s295_s11, 256  }
  0xc8   : > { %1260 = vsyncadd (%p1953_p2), %s295_s11, 4294967040  ;;  %s303_s24 = sand.u32 1, %s1457_s27   ;;  %s305_s19 = sand.u32 1, %s1295_s1  }
  0xc9   : > { %s797_s30 = sshll.u32 %s305_s19, 5  ;;  %s304_s20 = scalar_lea.sflag [#allocation10], %s303_s24 }
  0xca   : > { %s307_s12 = scalar_lea.vmem [#allocation9], %s797_s30  ;;  %p1954_p6 = scmp.ne.s32.totalorder %s1924_s9, 0 }
  0xcc   : > { %1262 = dma.done.wait (%p1954_p6), %s304_s20, 512  }
  0xcd   : > { %1264 = vsyncadd (%p1954_p6), %s304_s20, 4294966784  ;;  %s314_s28 = sand.u32 1, %s1283_s17   ;;  %p1955_p10 = scmp.ne.s32.totalorder %s1943_s21, 0 }
  0xce   : > { %s798_s29 = sshll.u32 %s314_s28, 6 }
  0xcf   : > { %s1765_s2 = scalar_lea.vmem [#allocation11], %s798_s29 }
  0xd0   : > { %1266 = dma.done.wait (%p1955_p10), %s304_s20, 1024  }
  0xd1   : > { %1268 = vsyncadd (%p1955_p10), %s304_s20, 4294966272  ;;  %s322_s27 = scalar_lea.sflag [#allocation13], %s1747_s23  ;;  %s325_s15 = scalar_lea.vmem [#allocation12], %s1750_s10 }
  0xd2   : > { %1270 = dma.done.wait (%p1953_p2), %s322_s27, 256  }
  0xd3   : > { %1272 = vsyncadd (%p1953_p2), %s322_s27, 4294967040  ;;  %s1956_s9 = sld [smem:[#allocation29_spill]]  ;;  %vm377_vm0 = vcmask 261120   ;;  %v1333_v0 = vmov 0.0   ;;  %s1781_s21 = scalar_lea.vmem [#allocation14], %s1750_s10 }
  0xd4   : > { %378 = vst.msk [vmem:[#allocation2] sm:$0xff] %vm377_vm0, %v1333_v0  ;;  %379 = vst.msk [vmem:[#allocation2 + $0x8] sm:$0xff] %vm377_vm0, %v1333_v0 }
  0xd9   : > { %s380_s25 = sld [smem:[#allocation5 + %s1956_s9]] }
  0xdf   : > { %p801_p3 = scmp.eq.s32.totalorder %s380_s25, 0 }
  0xe0   : > { %v387_v1 = vld [vmem:[%s307_s12] sm:$0xff] (!%p801_p3)  ;;  %v388_v2 = vld [vmem:[%s307_s12 + $0x8] sm:$0xff] (!%p801_p3)  ;;  %v389_v3 = vld [vmem:[%s307_s12 + $0x10] sm:$0xff] (!%p801_p3)  ;;  %s1334_s7 = smov (!%p801_p3), 64   ;;  %vm507_vm1 = vcmask (!%p801_p3), 523264  }
  0xe1   : > { %384 = sbr.rel (%p801_p3) target bundleno = 785 (0x311), region = 60  ;;  %v864_v4 = vpack.c.bf16 (!%p801_p3), %v388_v2, %v387_v1  ;;  %v390_v5 = vld [vmem:[%s307_s12 + $0x18] sm:$0xff] (!%p801_p3)  ;;  %v385_v6 = vld [vmem:[%s298_s26] sm:$0xff] (!%p801_p3)  ;;  %v500_v10 = vld [vmem:[%s1765_s2 + $0x8] sm:$0xff] (!%p801_p3) }
  0xe2   : > { %v868_v7 = vpack.c.bf16 (!%p801_p3), %v390_v5, %v389_v3  ;;  %842 = vmatprep.mubr.msk.f32.mxu0 (!%p801_p3), %vm377_vm0, %v385_v6  ;;  %v386_v8 = vld [vmem:[%s298_s26 + $0x8] sm:$0xff] (!%p801_p3)  ;;  %v499_v9 = vld [vmem:[%s1765_s2] sm:$0xff] (!%p801_p3)  ;;  %v501_v11 = vld [vmem:[%s1765_s2 + $0x10] sm:$0xff] (!%p801_p3) }
  0xe3   : > { %865 = vmatprep.subr.bf16.mxu0 (!%p801_p3), %v864_v4  ;;  %v872_v12 = vpack.c.bf16 (!%p801_p3), %v500_v10, %v499_v9  ;;  %v502_v13 = vld [vmem:[%s1765_s2 + $0x18] sm:$0xff] (!%p801_p3)  ;;  %v503_v15 = vld [vmem:[%s1765_s2 + $0x20] sm:$0xff] (!%p801_p3)  ;;  %v504_v16 = vld [vmem:[%s1765_s2 + $0x28] sm:$0xff] (!%p801_p3) }
  0xe4   : > { %867 = vmatpush3.bf16.msra.mxu0 (!%p801_p3), %v864_v4  ;;  %v876_v14 = vpack.c.bf16 (!%p801_p3), %v502_v13, %v501_v11  ;;  %v880_v17 = vpack.c.bf16 (!%p801_p3), %v504_v16, %v503_v15  ;;  %v505_v18 = vld [vmem:[%s1765_s2 + $0x30] sm:$0xff] (!%p801_p3)  ;;  %v506_v19 = vld [vmem:[%s1765_s2 + $0x38] sm:$0xff] (!%p801_p3) }
  0xe5   : > { %869 = vmatprep.subr.bf16.mxu0 (!%p801_p3), %v868_v7  ;;  %873 = vmatprep.subr.bf16.mxu1 (!%p801_p3), %v872_v12  ;;  %v884_v20 = vpack.c.bf16 (!%p801_p3), %v506_v19, %v505_v18  ;;  %v498_v37 = vld [vmem:[#allocation2 + $0x8] sm:$0xff] (!%p801_p3)  ;;  %v497_v38 = vld [vmem:[#allocation2] sm:$0xff] (!%p801_p3) }
  0xe6   : > { %875 = vmatpush3.bf16.msra.mxu1 (!%p801_p3), %v872_v12 }
  0xe7   : > { %877 = vmatprep.subr.bf16.mxu1 (!%p801_p3), %v876_v14 }
  0xe8   : > { %871 = vmatpush3.bf16.msra.mxu0 %v868_v7 }
  0xea   : > { %879 = vmatpush3.bf16.msra.mxu1 %v876_v14 }
  0xeb   : > { %843 = vmatmul.mubr.msk.f32.vlgmr.msra.gmra.mrb[0].mxu0 %vm377_vm0, %v386_v8  ;;  %881 = vmatprep.subr.bf16.mxu1 %v880_v17 }
  0xee   : > { %883 = vmatpush3.bf16.msra.mxu1 %v880_v17 }
  0xef   : > { %885 = vmatprep.subr.bf16.mxu1 %v884_v20 }
  0xf2   : > { %887 = vmatpush3.bf16.msra.mxu1 %v884_v20 }
 0x1be   : > { %v844_v21 = vpop.f32.mrb[0].mxu0 }
 0x1bf   : > { %v464_v22 = vpop.f32.mrb[1].mxu0  ;;  %v805_v24 = vmul.f32 -1.442695, %v844_v21 }
 0x1c0   : > { %489 = vrot.lane.b32.xlu0 %v464_v22, %s1334_s7  ;;  %v804_v23 = vmul.f32 -1.442695, %v464_v22 }
 0x1c2   : > { %1030 = vpow2.f32 %v804_v23 }
 0x1c3   : > { %1032 = vpow2.f32 %v805_v24 }
 0x1c4   : > { %491 = vrot.lane.b32.xlu0 %v844_v21, %s1334_s7 }
 0x1cc   : > { %v1031_v25 = vpop.eup %1030 }
 0x1cd   : > { %v479_v26 = vadd.f32 1.0, %v1031_v25  ;;  %v1033_v27 = vpop.eup %1032 }
 0x1ce   : > { %v480_v28 = vadd.f32 1.0, %v1033_v27 }
 0x1cf   : > { %1034 = vrcp.f32 %v479_v26 }
 0x1d0   : > { %1036 = vrcp.f32 %v480_v28 }
 0x1d9   : > { %v1035_v29 = vpop.eup %1034 }
 0x1da   : > { %v485_v30 = vmul.f32 %v1035_v29, %v464_v22  ;;  %v1037_v31 = vpop.eup %1036 }
 0x1db   : > { %v486_v34 = vmul.f32 %v1037_v31, %v844_v21 }
 0x232   : > { %v490_v32 = vpop.permute.xlu0 %489 }
 0x233   : > { %v495_v33 = vmul.f32 %v490_v32, %v485_v30 }
 0x235   : > { %861 = vmatprep.mubr.msk.f32.mxu1 %vm507_vm1, %v495_v33 }
 0x236   : > { %v492_v35 = vpop.permute.xlu0 %491 }
 0x237   : > { %v496_v36 = vmul.f32 %v492_v35, %v486_v34 }
 0x239   : > { %862 = vmatmul.mubr.msk.f32.vlgmr.msra.gmra.mrb[0].mxu1 %vm507_vm1, %v496_v36 }
 0x30c   : > { %v863_v39 = vpop.f32.mrb[0].mxu1 }
 0x30d   : > { %v590_v40 = vadd.f32 %v863_v39, %v498_v37  ;;  %v580_v41 = vpop.f32.mrb[1].mxu1 }
 0x30e   : > { %v589_v42 = vadd.f32 %v580_v41, %v497_v38 }
 0x30f   : > { %592 = vst.msk [vmem:[#allocation2 + $0x8] sm:$0xff] %vm377_vm0, %v590_v40 }
 0x310   : > { %591 = vst.msk [vmem:[#allocation2] sm:$0xff] %vm377_vm0, %v589_v42 }
 0x311 PF: > { %s1957_s8 = sld [smem:[#allocation29_spill]]  ;;  %v598_v43 = vld [vmem:[%s325_s15] sm:$0xff]  ;;  %v1335_v44 = vmov 0   ;;  %v599_v45 = vld [vmem:[%s325_s15 + $0x8] sm:$0xff]  ;;  %s1958_s16 = sld [smem:[#allocation35_spill]] }
 0x312   : > { %1038 = vset.pattern.permute.xlu0 %v1335_v44  ;;  %s629_s3 = sshll.u32 %s1781_s21, 4  ;;  %s1959_s18 = sld [smem:[#allocation40_spill]]  ;;  %s1812_s3 = int_to_ptr.vmem [resolvable:$true] %s629_s3 }
 0x313   : > { %602 = vperm.xlu0 %1038, %v598_v43   ;;  %s616_s10 = scalar_lea.sflag [#allocation8], %s1747_s23  ;;  %s1179_s26 = scalar_lea.vmem %s1812_s3, 256 }
 0x314   : > { %p1180_p5 = scmp.ne.s32.totalorder %s1812_s3, %s1179_s26  ;;  %s1336_s24 = smov [#allocation14]  }
 0x315   : > { %s1183_s19 = sshll.u32 %s1336_s24, 4  ;;  %s1184_s19 = int_to_ptr.vmem [resolvable:$false] %s1183_s19 }
 0x316   : > { %v597_v49 = vld [vmem:[#allocation2 + $0x8] sm:$0xff]  ;;  %s1185_s30 = scalar_lea.vmem %s1184_s19, 512  ;;  %p1186_p7 = scmp.lt.s32.totalorder %s1812_s3, %s1184_s19 }
 0x317   : > { %607 = vperm.xlu0 %1038, %v599_v45   ;;  %v596_v46 = vld [vmem:[#allocation2] sm:$0xff]  ;;  %s817_s6 = sshll.u32 %s1957_s8, 8  ;;  %p1961_p9 = scmp.ne.s32.totalorder %s1958_s16, 0 }
 0x318   : > { %s1960_s13 = smov %s1959_s18  ;;  %s1810_s11 = scalar_lea.hbm %s1959_s18, %s817_s6 }
 0x319   : > { %p1181_p1 = pnand %p1180_p5, %p1961_p9  ;;  %p1187_p4 = scmp.lt.s32.totalorder %s1185_s30, %s1179_s26 }
 0x31b   : > { %p1182_p0 = pneg %p1181_p1  ;;  %p1188_p13 = por %p1187_p4, %p1186_p7 }
 0x31d   : > { %p1189_p11 = pnand %p1188_p13, %p1182_p0 }
 0x392   : > { %v603_v47 = vpop.permute.xlu0 %602 }
 0x393   : > { %v610_v48 = vmul.f32 %v603_v47, %v596_v46 }
 0x395   : > { %613 = vst.msk [vmem:[%s1781_s21] sm:$0xff] %vm377_vm0, %v610_v48 }
 0x396   : > { %v608_v50 = vpop.permute.xlu0 %607 }
 0x397   : > { %v611_v51 = vmul.f32 %v608_v50, %v597_v49 }
 0x399   : > { %614 = vst.msk [vmem:[%s1781_s21 + $0x8] sm:$0xff] %vm377_vm0, %v611_v51 }
 0x39a   : > { %1192 = shalt.err (!%p1189_p11)
}
 0x39b   : > { %s1193_s20 = scalar_lea.hbm %s1810_s11, 256  ;;  %s1197_s29 = scalar_lea.hbm %s1960_s13, 1280 }
 0x39c   : > { %p1194_p12 = scmp.ne.s32.totalorder %s1810_s11, %s1193_s20  ;;  %p1198_p6 = scmp.lt.u32.totalorder %s1810_s11, %s1960_s13 }
 0x39d   : > { %p1199_p10 = scmp.lt.u32.totalorder %s1197_s29, %s1193_s20  ;;  %p1201_p5 = scmp.lt.u32.totalorder %s1193_s20, %s1810_s11 }
 0x39e   : > { %p1195_p8 = pnand %p1194_p12, %p1961_p9 }
 0x39f   : > { %p1200_p3 = por %p1199_p10, %p1198_p6 }
 0x3a0   : > { %p1196_p2 = pneg %p1195_p8 }
 0x3a1   : > { %p1202_p1 = por %p1201_p5, %p1200_p3 }
 0x3a3   : > { %p1203_p0 = pnand %p1202_p1, %p1196_p2 }
 0x3a5   : > { %1206 = shalt.err (!%p1203_p0)
}
 0x3a6   : > { %s1337_s15 = smov 128   ;;  %s1338_s9 = smov 8  }
 0x3a7   : > { %900 = dma.vmem_to_hbm [thread:$0]  (%p1961_p9), %s1812_s3, 256, %s1810_s11, %s616_s10, %s1337_s15, %s1337_s15, %s1338_s9  }
 0x3a8 PF: > { %s1962_s25 = sld [smem:[#allocation31_spill]]  ;;  %s1963_s21 = sld [smem:[#allocation27_spill]] }
 0x3a9   : > { %s1964_s7 = sld [smem:[#allocation36_spill]] }
 0x3ae   : > { %p924_p7 = scmp.ge.s32.totalorder %s1962_s25, 2  ;;  %s644_s8 = sand.u32 1, %s1963_s21  }
 0x3af   : > { %p1965_p4 = scmp.ne.s32.totalorder %s1964_s7, 0  ;;  %s645_s6 = scalar_lea.sflag [#allocation8], %s644_s8 }
 0x3b1   : > { %p920_p13 = pnand %p924_p7, %p1965_p4 }
 0x3b3   : > { %1274 = dma.done.wait (!%p920_p13), %s645_s6, 256  }
 0x3b4   : > { %1276 = vsyncadd (!%p920_p13), %s645_s6, 4294967040  ;;  %s34_s26 = sadd.s32 1, %s1962_s25   ;;  %s1966_s14 = sld [smem:[#allocation25_spill]] }
 0x3b5   : > { %p31_p11 = scmp.ge.s32.totalorder %s34_s26, 7   ;;  %s1967_s18 = sld [smem:[#allocation37_spill]] }
 0x3b6   : > { %s1968_s23 = sld [smem:[#allocation26_spill]]  ;;  %s1969_s20 = sld [smem:[#allocation33_spill]] }
 0x3b7   : > { %s1970_s16 = sld [smem:[#allocation28_spill]]  ;;  %s1971_s3 = sld [smem:[#allocation34_spill]] }
 0x3b8   : > { %s1972_s24 = sld [smem:[#allocation30_spill]]  ;;  %s1973_s25 = sld [smem:[#allocation32_spill]] }
 0x3b9   : > { %s1974_s0 = smov %s1283_s17  ;;  %s1976_s19 = smov %s1295_s1 }
 0x3ba   : > { %s1975_s17 = smov %s1966_s14  ;;  %s1978_s21 = smov %s1307_s22 }
 0x3bb   :  { %33 = sbr.rel (!%p31_p11) target bundleno = 33 (0x21), region = 130 }
 0x3bc   : > { %s1977_s1 = smov %s1968_s23 }
 0x3bd   : > { %s1979_s22 = smov %s1970_s16  ;;  %s1980_s23 = smov %s1971_s3 }
 0x3c2   :  { %650 = vsyncpa [#allocation7], 1 }
 0x3c3   :  { %652 = vsyncpa [#allocation7 + $0x1], 1 }
 0x3c4   :  { %653 = vsyncpa [#allocation10], 1 }
 0x3c5   :  { %655 = vsyncpa [#allocation10 + $0x1], 1 }
 0x3c6   :  { %656 = vsyncpa [#allocation13], 1 }
 0x3c7   :  { %658 = vsyncpa [#allocation13 + $0x1], 1 }
 0x3c8   :  { %659 = vsyncpa [#allocation8], 1 }
 0x3c9   :  { %661 = vsyncpa [#allocation8 + $0x1], 1 }

</bundles_post_ra>
